<compile_context>
chip_gen: v6e
topology: v6e:2x2x1
jax: 0.10.0
libtpu: 0.0.40
codegen_flags: <defaults>
</compile_context>

<pallas_src>
import jax
import jax.numpy as jnp
from jax.experimental import pallas as pl
from jax.experimental.pallas import tpu as pltpu


# ----------------------------- parameter packing -----------------------------

def pack_params(w_stack, b_stack, head_params):
    """One-time host-side packing into a single 128-lane f32 slab.

    Gate weights are fused + pre-transposed to (F, 4F) so (z @ w) is lane-dense,
    head weights are pre-transposed, output-layer pieces are pre-padded to 128
    lanes (so the kernel's final store is lane-dense).  Returns (slab, offsets)
    where offsets[name] = (row_start, rows, cols) for static in-kernel slicing.
    """
    C = w_stack.shape[0]
    F = w_stack.shape[2]
    LANES = 4 * F

    # w_packed[c, i, g*F + o] = w_stack[c, g, o, i]  =>  z @ w_packed[c] : (B, 4F)
    w_packed = jnp.transpose(w_stack, (0, 3, 1, 2)).reshape(C, F, LANES)
    b_packed = b_stack.reshape(C, LANES)

    (w1, b1, g1, be1, w2, b2, g2, be2, w3, b3, g3, be3,
     wout_f, wout_s, bout) = head_params
    F4 = wout_f.shape[1]

    rows, offsets = [], {}
    cur = 0

    def add(name, mat):
        nonlocal cur
        r, c = mat.shape
        block = jnp.zeros((r, LANES), jnp.float32).at[:, :c].set(mat)
        rows.append(block)
        offsets[name] = (cur, r, c)
        cur += r

    def align8():
        nonlocal cur
        pad = (-cur) % 8
        if pad:
            rows.append(jnp.zeros((pad, LANES), jnp.float32))
            cur += pad

    for c in range(C):
        add(f"gw{c}", w_packed[c])          # (F, 4F) packed gate weights
        align8()
    for c in range(C):
        add(f"gb{c}", b_packed[c][None, :])  # (1, 4F) packed gate biases
    align8()
    add("w1t", w1.T); align8()
    add("w2t", w2.T); align8()
    add("w3t", w3.T); align8()
    # output-layer pieces pre-padded to 128 lanes -> lane-dense kernel output
    add("woutf_t", jnp.zeros((F4, LANES), jnp.float32).at[:, :2].set(wout_f.T))
    align8()
    for name, v in (("hb1", b1), ("g1", g1), ("be1", be1),
                    ("hb2", b2), ("g2", g2), ("be2", be2),
                    ("hb3", b3), ("g3", g3), ("be3", be3)):
        add(name, v)
    add("wout_s", jnp.zeros((1, LANES), jnp.float32).at[:, :2].set(wout_s))
    add("bout", jnp.zeros((1, LANES), jnp.float32).at[:, :2].set(bout))
    align8()

    slab = jnp.concatenate(rows, axis=0)     # (176, 128) f32 at default sizes
    return slab, offsets


# ------------------------- fused LSTM + head kernel --------------------------

def _make_kernel(offsets, n_lstm_cells):
    C = n_lstm_cells

    def kernel(x_ref, p_ref, sent_ref, out_ref):
        D, B, F = x_ref.shape            # gate packing assumes lanes == 4*F == 128

        def get(name):
            r0, r, c = offsets[name]
            return p_ref[r0:r0 + r, 0:c]   # static slice -> plain VMEM load

        # Hoist all parameter loads; reused across the fully-unrolled steps.
        gw = [get(f"gw{c}") for c in range(C)]   # (F, 4F)
        gb = [get(f"gb{c}") for c in range(C)]   # (1, 4F)

        h = jnp.zeros((B, F), jnp.float32)                      # short_term_memory
        cell = [jnp.zeros((B, F), jnp.float32) for _ in range(C)]  # cell_state / cell

        # ---- LSTM recurrence, fully unrolled (D and C are tiny static consts).
        for d in range(D):
            x = x_ref[d]                                        # (B, F) day batch
            for c in range(C):
                z = x + h                                       # inputs + short_term_memory
                # one lane-dense MXU push; cols = [fg_sig | ig_sig | ig_tanh | og_sig]
                gates = jnp.dot(z, gw[c], preferred_element_type=jnp.float32) + gb[c]
                # full-vreg activations: 2 EUP pushes (+ tanh(old cell)) per step
                sig = jax.nn.sigmoid(gates)
                tnh = jnp.tanh(gates)
                # align the ig_tanh block (lanes 2F:3F) with the ig_sig block
                # (lanes F:2F) via one XLU roll (shift 3F == -F mod 4F).
                prod = sig * pltpu.roll(tnh, shift=3 * F, axis=1)
                fg = sig[:, 0 * F:1 * F]
                ig = prod[:, 1 * F:2 * F]
                # OutputGate uses tanh of the OLD cell state (matches PyTorch module).
                og = jnp.tanh(cell[c]) * sig[:, 3 * F:4 * F]
                cell[c] = cell[c] * fg + ig
                h = og

        # ---- MLP head epilogue: (Linear + BatchNorm1d(train stats) + ReLU) x3,
        #      then Linear(->2) with the sentiment concat folded into a split matmul.
        eps = 1e-5

        def lin_bn_relu(xv, wt, b, g, be):
            y = jnp.dot(xv, wt, preferred_element_type=jnp.float32) + b
            mu = jnp.mean(y, axis=0, keepdims=True)
            var = jnp.mean((y - mu) * (y - mu), axis=0, keepdims=True)
            y = (y - mu) * jax.lax.rsqrt(var + eps) * g + be
            return jnp.maximum(y, 0.0)

        f = lin_bn_relu(h, get("w1t"), get("hb1"), get("g1"), get("be1"))
        f = lin_bn_relu(f, get("w2t"), get("hb2"), get("g2"), get("be2"))
        f = lin_bn_relu(f, get("w3t"), get("hb3"), get("g3"), get("be3"))

        # lane-dense (B, 4F) output; lanes [0:2] are the real logits, rest zero.
        out = (jnp.dot(f, get("woutf_t"), preferred_element_type=jnp.float32)
               + sent_ref[...] * get("wout_s")
               + get("bout"))
        out_ref[...] = out                       # single unmasked (B, 128) store

    return kernel


def build_forward(offsets, n_lstm_cells, n_features, batch_size):
    LANES = 4 * n_features
    kernel = _make_kernel(offsets, n_lstm_cells)
    vspec = pl.BlockSpec(memory_space=pltpu.MemorySpace.VMEM)

    @jax.jit
    def forward(inputs, slab, sent):
        out = pl.pallas_call(
            kernel,
            out_shape=jax.ShapeDtypeStruct((batch_size, LANES), jnp.float32),
            in_specs=[vspec, vspec, vspec],
            out_specs=vspec,
        )(inputs, slab, sent)
        return out[:, :2]

    return forward


# ------------------------------ parameter init -------------------------------

def init_params(key, n_features, n_lstm_cells, uses_single_sentiments):
    F = n_features
    F2, F4 = F // 2, F // 4
    ks = jax.random.split(key, 16)

    # LSTM gate params: 4 linear layers per cell (forget-sig, in-sig, in-tanh, out-sig)
    # TODO(synk): OutputGate.tanh_layer exists in the PyTorch module but is never
    # used in its forward, so it is not instantiated here.
    w_stack = 0.1 * jax.random.normal(ks[0], (n_lstm_cells, 4, F, F), jnp.float32)
    b_stack = 0.1 * jax.random.normal(ks[1], (n_lstm_cells, 4, F), jnp.float32)

    def lin(kw, kb, out_d, in_d):
        return (0.1 * jax.random.normal(kw, (out_d, in_d), jnp.float32),
                0.1 * jax.random.normal(kb, (1, out_d), jnp.float32))

    w1, b1 = lin(ks[2], ks[3], F, F)
    w2, b2 = lin(ks[4], ks[5], F2, F)
    w3, b3 = lin(ks[6], ks[7], F4, F2)
    g1, be1 = jnp.ones((1, F), jnp.float32), jnp.zeros((1, F), jnp.float32)
    g2, be2 = jnp.ones((1, F2), jnp.float32), jnp.zeros((1, F2), jnp.float32)
    g3, be3 = jnp.ones((1, F4), jnp.float32), jnp.zeros((1, F4), jnp.float32)

    wout = 0.1 * jax.random.normal(ks[8], (2, F4 + uses_single_sentiments), jnp.float32)
    bout = 0.1 * jax.random.normal(ks[9], (1, 2), jnp.float32)
    wout_f = wout[:, :F4]                    # (2, F4)  multiplies the MLP features
    wout_s = wout[:, F4:].T                  # (1, 2)   multiplies the sentiment col
    head_params = (w1, b1, g1, be1, w2, b2, g2, be2, w3, b3, g3, be3,
                   wout_f, wout_s, bout)
    return w_stack, b_stack, head_params


# -------------------------------- pure-JAX ref --------------------------------

def reference_forward(inputs, w_stack, b_stack, head_params, sent):
    D, B, F = inputs.shape
    C = w_stack.shape[0]
    h = jnp.zeros((B, F), jnp.float32)
    cs = jnp.zeros((C, B, F), jnp.float32)
    for d in range(D):
        x = inputs[d]
        for c in range(C):
            z = x + h
            f = jax.nn.sigmoid(z @ w_stack[c, 0].T + b_stack[c, 0])
            ig = (jax.nn.sigmoid(z @ w_stack[c, 1].T + b_stack[c, 1])
                  * jnp.tanh(z @ w_stack[c, 2].T + b_stack[c, 2]))
            og = jnp.tanh(cs[c]) * jax.nn.sigmoid(z @ w_stack[c, 3].T + b_stack[c, 3])
            cs = cs.at[c].set(cs[c] * f + ig)
            h = og
    (w1, b1, g1, be1, w2, b2, g2, be2, w3, b3, g3, be3,
     wout_f, wout_s, bout) = head_params
    eps = 1e-5

    def lbr(x, w, b, g, be):
        y = x @ w.T + b
        mu = jnp.mean(y, axis=0, keepdims=True)
        var = jnp.mean((y - mu) ** 2, axis=0, keepdims=True)
        return jnp.maximum((y - mu) / jnp.sqrt(var + eps) * g + be, 0.0)

    x = lbr(h, w1, b1, g1, be1)
    x = lbr(x, w2, b2, g2, be2)
    x = lbr(x, w3, b3, g3, be3)
    return x @ wout_f.T + sent * wout_s + bout


# ------------------------------------ main ------------------------------------

if __name__ == "__main__":
    # hyperparameters
    num_context_days = 4
    batch_size = 8
    n_features = 32
    n_lstm_cells = 2
    uses_single_sentiments = 1

    key = jax.random.PRNGKey(0)
    k_in, k_sent, k_par = jax.random.split(key, 3)
    inputs = jax.random.normal(
        k_in, (num_context_days, batch_size, n_features), jnp.float32)
    sentiment = jax.random.normal(
        k_sent, (batch_size, uses_single_sentiments), jnp.float32)

    w_stack, b_stack, head_params = init_params(
        k_par, n_features, n_lstm_cells, uses_single_sentiments)

    # One-time host-side packing (hoisted out of the forward path), then a
    # single jitted forward: one dispatch, one pallas_call, 3 input DMAs.
    slab, offsets = pack_params(w_stack, b_stack, head_params)
    forward = build_forward(offsets, n_lstm_cells, n_features, batch_size)

    out = forward(inputs, slab, sentiment)
    out = jax.block_until_ready(out)

    ref = reference_forward(inputs, w_stack, b_stack, head_params, sentiment)
    assert out.shape == (batch_size, 2)
    assert jnp.max(jnp.abs(out - ref)) < 1e-3, "mismatch vs pure-JAX reference"

    print("KERNEL_OK")
</pallas_src>

<mosaic_0001>
module attributes {stable_mosaic.version = 11 : i64} {
  func.func @kernel(%arg0: memref<4x8x32xf32, #tpu.memory_space<vmem>>, %arg1: memref<176x128xf32, #tpu.memory_space<vmem>>, %arg2: memref<8x1xf32, #tpu.memory_space<vmem>>, %arg3: memref<8x128xf32, #tpu.memory_space<vmem>>) attributes {dimension_semantics = [], scalar_prefetch = 0 : i64, scratch_operands = 0 : i64, tpu.core_type = #tpu.core_type<tc>} {
    %c0 = arith.constant 0 : index
    %c0_0 = arith.constant 0 : index
    %0 = vector.load %arg1[%c0, %c0_0] : memref<176x128xf32, #tpu.memory_space<vmem>>, vector<32x128xf32>
    %c32 = arith.constant 32 : index
    %c0_1 = arith.constant 0 : index
    %1 = vector.load %arg1[%c32, %c0_1] : memref<176x128xf32, #tpu.memory_space<vmem>>, vector<32x128xf32>
    %c64 = arith.constant 64 : index
    %c0_2 = arith.constant 0 : index
    %2 = vector.load %arg1[%c64, %c0_2] : memref<176x128xf32, #tpu.memory_space<vmem>>, vector<1x128xf32>
    %c65 = arith.constant 65 : index
    %c0_3 = arith.constant 0 : index
    %3 = vector.load %arg1[%c65, %c0_3] : memref<176x128xf32, #tpu.memory_space<vmem>>, vector<1x128xf32>
    %cst = arith.constant 0.000000e+00 : f32
    %4 = vector.broadcast %cst : f32 to vector<8x32xf32>
    %cst_4 = arith.constant 0.000000e+00 : f32
    %5 = vector.broadcast %cst_4 : f32 to vector<8x32xf32>
    %cst_5 = arith.constant 0.000000e+00 : f32
    %6 = vector.broadcast %cst_5 : f32 to vector<8x32xf32>
    %c0_6 = arith.constant 0 : index
    %c0_7 = arith.constant 0 : index
    %c0_8 = arith.constant 0 : index
    %7 = vector.load %arg0[%c0_6, %c0_7, %c0_8] : memref<4x8x32xf32, #tpu.memory_space<vmem>>, vector<1x8x32xf32>
    %8 = vector.shape_cast %7 : vector<1x8x32xf32> to vector<8x32xf32>
    %9 = arith.addf %8, %4 : vector<8x32xf32>
    %cst_9 = arith.constant dense<0.000000e+00> : vector<8x128xf32>
    %10 = tpu.matmul %9, %0, %cst_9 {dimension_numbers = #tpu.dot_dimension_numbers<[1], [0], [0], [1], [0, 0, 1, 1], [], []>} : vector<8x32xf32>, vector<32x128xf32>, vector<8x128xf32> -> vector<8x128xf32>
    %11 = vector.broadcast %2 : vector<1x128xf32> to vector<8x128xf32>
    %12 = arith.addf %10, %11 : vector<8x128xf32>
    %13 = arith.negf %12 : vector<8x128xf32>
    %14 = math.exp %13 : vector<8x128xf32>
    %cst_10 = arith.constant 1.000000e+00 : f32
    %15 = vector.broadcast %cst_10 : f32 to vector<8x128xf32>
    %16 = arith.addf %15, %14 : vector<8x128xf32>
    %17 = arith.divf %15, %16 : vector<8x128xf32>
    %18 = math.tanh %12 : vector<8x128xf32>
    %c96_i32 = arith.constant 96 : i32
    %19 = tpu.dynamic_rotate %18 by %c96_i32 dim 1 : vector<8x128xf32>, i32 -> vector<8x128xf32>
    %20 = arith.mulf %17, %19 : vector<8x128xf32>
    %21 = vector.extract_strided_slice %17 {offsets = [0, 0], sizes = [8, 32], strides = [1, 1]} : vector<8x128xf32> to vector<8x32xf32>
    %22 = vector.extract_strided_slice %20 {offsets = [0, 32], sizes = [8, 32], strides = [1, 1]} : vector<8x128xf32> to vector<8x32xf32>
    %23 = math.tanh %5 : vector<8x32xf32>
    %24 = vector.extract_strided_slice %17 {offsets = [0, 96], sizes = [8, 32], strides = [1, 1]} : vector<8x128xf32> to vector<8x32xf32>
    %25 = arith.mulf %23, %24 : vector<8x32xf32>
    %26 = arith.mulf %5, %21 : vector<8x32xf32>
    %27 = arith.addf %26, %22 : vector<8x32xf32>
    %28 = arith.addf %8, %25 : vector<8x32xf32>
    %cst_11 = arith.constant dense<0.000000e+00> : vector<8x128xf32>
    %29 = tpu.matmul %28, %1, %cst_11 {dimension_numbers = #tpu.dot_dimension_numbers<[1], [0], [0], [1], [0, 0, 1, 1], [], []>} : vector<8x32xf32>, vector<32x128xf32>, vector<8x128xf32> -> vector<8x128xf32>
    %30 = vector.broadcast %3 : vector<1x128xf32> to vector<8x128xf32>
    %31 = arith.addf %29, %30 : vector<8x128xf32>
    %32 = arith.negf %31 : vector<8x128xf32>
    %33 = math.exp %32 : vector<8x128xf32>
    %cst_12 = arith.constant 1.000000e+00 : f32
    %34 = vector.broadcast %cst_12 : f32 to vector<8x128xf32>
    %35 = arith.addf %34, %33 : vector<8x128xf32>
    %36 = arith.divf %34, %35 : vector<8x128xf32>
    %37 = math.tanh %31 : vector<8x128xf32>
    %c96_i32_13 = arith.constant 96 : i32
    %38 = tpu.dynamic_rotate %37 by %c96_i32_13 dim 1 : vector<8x128xf32>, i32 -> vector<8x128xf32>
    %39 = arith.mulf %36, %38 : vector<8x128xf32>
    %40 = vector.extract_strided_slice %36 {offsets = [0, 0], sizes = [8, 32], strides = [1, 1]} : vector<8x128xf32> to vector<8x32xf32>
    %41 = vector.extract_strided_slice %39 {offsets = [0, 32], sizes = [8, 32], strides = [1, 1]} : vector<8x128xf32> to vector<8x32xf32>
    %42 = math.tanh %6 : vector<8x32xf32>
    %43 = vector.extract_strided_slice %36 {offsets = [0, 96], sizes = [8, 32], strides = [1, 1]} : vector<8x128xf32> to vector<8x32xf32>
    %44 = arith.mulf %42, %43 : vector<8x32xf32>
    %45 = arith.mulf %6, %40 : vector<8x32xf32>
    %46 = arith.addf %45, %41 : vector<8x32xf32>
    %c1 = arith.constant 1 : index
    %c0_14 = arith.constant 0 : index
    %c0_15 = arith.constant 0 : index
    %47 = vector.load %arg0[%c1, %c0_14, %c0_15] : memref<4x8x32xf32, #tpu.memory_space<vmem>>, vector<1x8x32xf32>
    %48 = vector.shape_cast %47 : vector<1x8x32xf32> to vector<8x32xf32>
    %49 = arith.addf %48, %44 : vector<8x32xf32>
    %cst_16 = arith.constant dense<0.000000e+00> : vector<8x128xf32>
    %50 = tpu.matmul %49, %0, %cst_16 {dimension_numbers = #tpu.dot_dimension_numbers<[1], [0], [0], [1], [0, 0, 1, 1], [], []>} : vector<8x32xf32>, vector<32x128xf32>, vector<8x128xf32> -> vector<8x128xf32>
    %51 = vector.broadcast %2 : vector<1x128xf32> to vector<8x128xf32>
    %52 = arith.addf %50, %51 : vector<8x128xf32>
    %53 = arith.negf %52 : vector<8x128xf32>
    %54 = math.exp %53 : vector<8x128xf32>
    %cst_17 = arith.constant 1.000000e+00 : f32
    %55 = vector.broadcast %cst_17 : f32 to vector<8x128xf32>
    %56 = arith.addf %55, %54 : vector<8x128xf32>
    %57 = arith.divf %55, %56 : vector<8x128xf32>
    %58 = math.tanh %52 : vector<8x128xf32>
    %c96_i32_18 = arith.constant 96 : i32
    %59 = tpu.dynamic_rotate %58 by %c96_i32_18 dim 1 : vector<8x128xf32>, i32 -> vector<8x128xf32>
    %60 = arith.mulf %57, %59 : vector<8x128xf32>
    %61 = vector.extract_strided_slice %57 {offsets = [0, 0], sizes = [8, 32], strides = [1, 1]} : vector<8x128xf32> to vector<8x32xf32>
    %62 = vector.extract_strided_slice %60 {offsets = [0, 32], sizes = [8, 32], strides = [1, 1]} : vector<8x128xf32> to vector<8x32xf32>
    %63 = math.tanh %27 : vector<8x32xf32>
    %64 = vector.extract_strided_slice %57 {offsets = [0, 96], sizes = [8, 32], strides = [1, 1]} : vector<8x128xf32> to vector<8x32xf32>
    %65 = arith.mulf %63, %64 : vector<8x32xf32>
    %66 = arith.mulf %27, %61 : vector<8x32xf32>
    %67 = arith.addf %66, %62 : vector<8x32xf32>
    %68 = arith.addf %48, %65 : vector<8x32xf32>
    %cst_19 = arith.constant dense<0.000000e+00> : vector<8x128xf32>
    %69 = tpu.matmul %68, %1, %cst_19 {dimension_numbers = #tpu.dot_dimension_numbers<[1], [0], [0], [1], [0, 0, 1, 1], [], []>} : vector<8x32xf32>, vector<32x128xf32>, vector<8x128xf32> -> vector<8x128xf32>
    %70 = vector.broadcast %3 : vector<1x128xf32> to vector<8x128xf32>
    %71 = arith.addf %69, %70 : vector<8x128xf32>
    %72 = arith.negf %71 : vector<8x128xf32>
    %73 = math.exp %72 : vector<8x128xf32>
    %cst_20 = arith.constant 1.000000e+00 : f32
    %74 = vector.broadcast %cst_20 : f32 to vector<8x128xf32>
    %75 = arith.addf %74, %73 : vector<8x128xf32>
    %76 = arith.divf %74, %75 : vector<8x128xf32>
    %77 = math.tanh %71 : vector<8x128xf32>
    %c96_i32_21 = arith.constant 96 : i32
    %78 = tpu.dynamic_rotate %77 by %c96_i32_21 dim 1 : vector<8x128xf32>, i32 -> vector<8x128xf32>
    %79 = arith.mulf %76, %78 : vector<8x128xf32>
    %80 = vector.extract_strided_slice %76 {offsets = [0, 0], sizes = [8, 32], strides = [1, 1]} : vector<8x128xf32> to vector<8x32xf32>
    %81 = vector.extract_strided_slice %79 {offsets = [0, 32], sizes = [8, 32], strides = [1, 1]} : vector<8x128xf32> to vector<8x32xf32>
    %82 = math.tanh %46 : vector<8x32xf32>
    %83 = vector.extract_strided_slice %76 {offsets = [0, 96], sizes = [8, 32], strides = [1, 1]} : vector<8x128xf32> to vector<8x32xf32>
    %84 = arith.mulf %82, %83 : vector<8x32xf32>
    %85 = arith.mulf %46, %80 : vector<8x32xf32>
    %86 = arith.addf %85, %81 : vector<8x32xf32>
    %c2 = arith.constant 2 : index
    %c0_22 = arith.constant 0 : index
    %c0_23 = arith.constant 0 : index
    %87 = vector.load %arg0[%c2, %c0_22, %c0_23] : memref<4x8x32xf32, #tpu.memory_space<vmem>>, vector<1x8x32xf32>
    %88 = vector.shape_cast %87 : vector<1x8x32xf32> to vector<8x32xf32>
    %89 = arith.addf %88, %84 : vector<8x32xf32>
    %cst_24 = arith.constant dense<0.000000e+00> : vector<8x128xf32>
    %90 = tpu.matmul %89, %0, %cst_24 {dimension_numbers = #tpu.dot_dimension_numbers<[1], [0], [0], [1], [0, 0, 1, 1], [], []>} : vector<8x32xf32>, vector<32x128xf32>, vector<8x128xf32> -> vector<8x128xf32>
    %91 = vector.broadcast %2 : vector<1x128xf32> to vector<8x128xf32>
    %92 = arith.addf %90, %91 : vector<8x128xf32>
    %93 = arith.negf %92 : vector<8x128xf32>
    %94 = math.exp %93 : vector<8x128xf32>
    %cst_25 = arith.constant 1.000000e+00 : f32
    %95 = vector.broadcast %cst_25 : f32 to vector<8x128xf32>
    %96 = arith.addf %95, %94 : vector<8x128xf32>
    %97 = arith.divf %95, %96 : vector<8x128xf32>
    %98 = math.tanh %92 : vector<8x128xf32>
    %c96_i32_26 = arith.constant 96 : i32
    %99 = tpu.dynamic_rotate %98 by %c96_i32_26 dim 1 : vector<8x128xf32>, i32 -> vector<8x128xf32>
    %100 = arith.mulf %97, %99 : vector<8x128xf32>
    %101 = vector.extract_strided_slice %97 {offsets = [0, 0], sizes = [8, 32], strides = [1, 1]} : vector<8x128xf32> to vector<8x32xf32>
    %102 = vector.extract_strided_slice %100 {offsets = [0, 32], sizes = [8, 32], strides = [1, 1]} : vector<8x128xf32> to vector<8x32xf32>
    %103 = math.tanh %67 : vector<8x32xf32>
    %104 = vector.extract_strided_slice %97 {offsets = [0, 96], sizes = [8, 32], strides = [1, 1]} : vector<8x128xf32> to vector<8x32xf32>
    %105 = arith.mulf %103, %104 : vector<8x32xf32>
    %106 = arith.mulf %67, %101 : vector<8x32xf32>
    %107 = arith.addf %106, %102 : vector<8x32xf32>
    %108 = arith.addf %88, %105 : vector<8x32xf32>
    %cst_27 = arith.constant dense<0.000000e+00> : vector<8x128xf32>
    %109 = tpu.matmul %108, %1, %cst_27 {dimension_numbers = #tpu.dot_dimension_numbers<[1], [0], [0], [1], [0, 0, 1, 1], [], []>} : vector<8x32xf32>, vector<32x128xf32>, vector<8x128xf32> -> vector<8x128xf32>
    %110 = vector.broadcast %3 : vector<1x128xf32> to vector<8x128xf32>
    %111 = arith.addf %109, %110 : vector<8x128xf32>
    %112 = arith.negf %111 : vector<8x128xf32>
    %113 = math.exp %112 : vector<8x128xf32>
    %cst_28 = arith.constant 1.000000e+00 : f32
    %114 = vector.broadcast %cst_28 : f32 to vector<8x128xf32>
    %115 = arith.addf %114, %113 : vector<8x128xf32>
    %116 = arith.divf %114, %115 : vector<8x128xf32>
    %117 = math.tanh %111 : vector<8x128xf32>
    %c96_i32_29 = arith.constant 96 : i32
    %118 = tpu.dynamic_rotate %117 by %c96_i32_29 dim 1 : vector<8x128xf32>, i32 -> vector<8x128xf32>
    %119 = arith.mulf %116, %118 : vector<8x128xf32>
    %120 = vector.extract_strided_slice %116 {offsets = [0, 0], sizes = [8, 32], strides = [1, 1]} : vector<8x128xf32> to vector<8x32xf32>
    %121 = vector.extract_strided_slice %119 {offsets = [0, 32], sizes = [8, 32], strides = [1, 1]} : vector<8x128xf32> to vector<8x32xf32>
    %122 = math.tanh %86 : vector<8x32xf32>
    %123 = vector.extract_strided_slice %116 {offsets = [0, 96], sizes = [8, 32], strides = [1, 1]} : vector<8x128xf32> to vector<8x32xf32>
    %124 = arith.mulf %122, %123 : vector<8x32xf32>
    %125 = arith.mulf %86, %120 : vector<8x32xf32>
    %126 = arith.addf %125, %121 : vector<8x32xf32>
    %c3 = arith.constant 3 : index
    %c0_30 = arith.constant 0 : index
    %c0_31 = arith.constant 0 : index
    %127 = vector.load %arg0[%c3, %c0_30, %c0_31] : memref<4x8x32xf32, #tpu.memory_space<vmem>>, vector<1x8x32xf32>
    %128 = vector.shape_cast %127 : vector<1x8x32xf32> to vector<8x32xf32>
    %129 = arith.addf %128, %124 : vector<8x32xf32>
    %cst_32 = arith.constant dense<0.000000e+00> : vector<8x128xf32>
    %130 = tpu.matmul %129, %0, %cst_32 {dimension_numbers = #tpu.dot_dimension_numbers<[1], [0], [0], [1], [0, 0, 1, 1], [], []>} : vector<8x32xf32>, vector<32x128xf32>, vector<8x128xf32> -> vector<8x128xf32>
    %131 = vector.broadcast %2 : vector<1x128xf32> to vector<8x128xf32>
    %132 = arith.addf %130, %131 : vector<8x128xf32>
    %133 = arith.negf %132 : vector<8x128xf32>
    %134 = math.exp %133 : vector<8x128xf32>
    %cst_33 = arith.constant 1.000000e+00 : f32
    %135 = vector.broadcast %cst_33 : f32 to vector<8x128xf32>
    %136 = arith.addf %135, %134 : vector<8x128xf32>
    %137 = arith.divf %135, %136 : vector<8x128xf32>
    %138 = math.tanh %107 : vector<8x32xf32>
    %139 = vector.extract_strided_slice %137 {offsets = [0, 96], sizes = [8, 32], strides = [1, 1]} : vector<8x128xf32> to vector<8x32xf32>
    %140 = arith.mulf %138, %139 : vector<8x32xf32>
    %141 = arith.addf %128, %140 : vector<8x32xf32>
    %cst_34 = arith.constant dense<0.000000e+00> : vector<8x128xf32>
    %142 = tpu.matmul %141, %1, %cst_34 {dimension_numbers = #tpu.dot_dimension_numbers<[1], [0], [0], [1], [0, 0, 1, 1], [], []>} : vector<8x32xf32>, vector<32x128xf32>, vector<8x128xf32> -> vector<8x128xf32>
    %143 = vector.broadcast %3 : vector<1x128xf32> to vector<8x128xf32>
    %144 = arith.addf %142, %143 : vector<8x128xf32>
    %145 = arith.negf %144 : vector<8x128xf32>
    %146 = math.exp %145 : vector<8x128xf32>
    %cst_35 = arith.constant 1.000000e+00 : f32
    %147 = vector.broadcast %cst_35 : f32 to vector<8x128xf32>
    %148 = arith.addf %147, %146 : vector<8x128xf32>
    %149 = arith.divf %147, %148 : vector<8x128xf32>
    %150 = math.tanh %126 : vector<8x32xf32>
    %151 = vector.extract_strided_slice %149 {offsets = [0, 96], sizes = [8, 32], strides = [1, 1]} : vector<8x128xf32> to vector<8x32xf32>
    %152 = arith.mulf %150, %151 : vector<8x32xf32>
    %c72 = arith.constant 72 : index
    %c0_36 = arith.constant 0 : index
    %153 = vector.load %arg1[%c72, %c0_36] : memref<176x128xf32, #tpu.memory_space<vmem>>, vector<32x32xf32>
    %c160 = arith.constant 160 : index
    %c0_37 = arith.constant 0 : index
    %154 = vector.load %arg1[%c160, %c0_37] : memref<176x128xf32, #tpu.memory_space<vmem>>, vector<1x32xf32>
    %c161 = arith.constant 161 : index
    %c0_38 = arith.constant 0 : index
    %155 = vector.load %arg1[%c161, %c0_38] : memref<176x128xf32, #tpu.memory_space<vmem>>, vector<1x32xf32>
    %c162 = arith.constant 162 : index
    %c0_39 = arith.constant 0 : index
    %156 = vector.load %arg1[%c162, %c0_39] : memref<176x128xf32, #tpu.memory_space<vmem>>, vector<1x32xf32>
    %cst_40 = arith.constant dense<0.000000e+00> : vector<8x32xf32>
    %157 = tpu.matmul %152, %153, %cst_40 {dimension_numbers = #tpu.dot_dimension_numbers<[1], [0], [0], [1], [0, 0, 1, 1], [], []>} : vector<8x32xf32>, vector<32x32xf32>, vector<8x32xf32> -> vector<8x32xf32>
    %158 = vector.broadcast %154 : vector<1x32xf32> to vector<8x32xf32>
    %159 = arith.addf %157, %158 : vector<8x32xf32>
    %cst_41 = arith.constant dense<0.000000e+00> : vector<32xf32>
    %160 = vector.multi_reduction <add>, %159, %cst_41 [0] : vector<8x32xf32> to vector<32xf32>
    %161 = vector.shape_cast %160 : vector<32xf32> to vector<1x32xf32>
    %cst_42 = arith.constant 8.000000e+00 : f32
    %162 = vector.broadcast %cst_42 : f32 to vector<1x32xf32>
    %163 = arith.divf %161, %162 : vector<1x32xf32>
    %164 = vector.broadcast %163 : vector<1x32xf32> to vector<8x32xf32>
    %165 = arith.subf %159, %164 : vector<8x32xf32>
    %166 = vector.broadcast %163 : vector<1x32xf32> to vector<8x32xf32>
    %167 = arith.subf %159, %166 : vector<8x32xf32>
    %168 = arith.mulf %165, %167 : vector<8x32xf32>
    %cst_43 = arith.constant dense<0.000000e+00> : vector<32xf32>
    %169 = vector.multi_reduction <add>, %168, %cst_43 [0] : vector<8x32xf32> to vector<32xf32>
    %170 = vector.shape_cast %169 : vector<32xf32> to vector<1x32xf32>
    %cst_44 = arith.constant 8.000000e+00 : f32
    %171 = vector.broadcast %cst_44 : f32 to vector<1x32xf32>
    %172 = arith.divf %170, %171 : vector<1x32xf32>
    %173 = vector.broadcast %163 : vector<1x32xf32> to vector<8x32xf32>
    %174 = arith.subf %159, %173 : vector<8x32xf32>
    %cst_45 = arith.constant 9.99999974E-6 : f32
    %175 = vector.broadcast %cst_45 : f32 to vector<1x32xf32>
    %176 = arith.addf %172, %175 : vector<1x32xf32>
    %177 = math.rsqrt %176 : vector<1x32xf32>
    %178 = vector.broadcast %177 : vector<1x32xf32> to vector<8x32xf32>
    %179 = arith.mulf %174, %178 : vector<8x32xf32>
    %180 = vector.broadcast %155 : vector<1x32xf32> to vector<8x32xf32>
    %181 = arith.mulf %179, %180 : vector<8x32xf32>
    %182 = vector.broadcast %156 : vector<1x32xf32> to vector<8x32xf32>
    %183 = arith.addf %181, %182 : vector<8x32xf32>
    %cst_46 = arith.constant 0.000000e+00 : f32
    %184 = vector.broadcast %cst_46 : f32 to vector<8x32xf32>
    %185 = arith.maximumf %183, %184 : vector<8x32xf32>
    %c104 = arith.constant 104 : index
    %c0_47 = arith.constant 0 : index
    %186 = vector.load %arg1[%c104, %c0_47] : memref<176x128xf32, #tpu.memory_space<vmem>>, vector<32x16xf32>
    %c163 = arith.constant 163 : index
    %c0_48 = arith.constant 0 : index
    %187 = vector.load %arg1[%c163, %c0_48] : memref<176x128xf32, #tpu.memory_space<vmem>>, vector<1x16xf32>
    %c164 = arith.constant 164 : index
    %c0_49 = arith.constant 0 : index
    %188 = vector.load %arg1[%c164, %c0_49] : memref<176x128xf32, #tpu.memory_space<vmem>>, vector<1x16xf32>
    %c165 = arith.constant 165 : index
    %c0_50 = arith.constant 0 : index
    %189 = vector.load %arg1[%c165, %c0_50] : memref<176x128xf32, #tpu.memory_space<vmem>>, vector<1x16xf32>
    %cst_51 = arith.constant dense<0.000000e+00> : vector<8x16xf32>
    %190 = tpu.matmul %185, %186, %cst_51 {dimension_numbers = #tpu.dot_dimension_numbers<[1], [0], [0], [1], [0, 0, 1, 1], [], []>} : vector<8x32xf32>, vector<32x16xf32>, vector<8x16xf32> -> vector<8x16xf32>
    %191 = vector.broadcast %187 : vector<1x16xf32> to vector<8x16xf32>
    %192 = arith.addf %190, %191 : vector<8x16xf32>
    %cst_52 = arith.constant dense<0.000000e+00> : vector<16xf32>
    %193 = vector.multi_reduction <add>, %192, %cst_52 [0] : vector<8x16xf32> to vector<16xf32>
    %194 = vector.shape_cast %193 : vector<16xf32> to vector<1x16xf32>
    %cst_53 = arith.constant 8.000000e+00 : f32
    %195 = vector.broadcast %cst_53 : f32 to vector<1x16xf32>
    %196 = arith.divf %194, %195 : vector<1x16xf32>
    %197 = vector.broadcast %196 : vector<1x16xf32> to vector<8x16xf32>
    %198 = arith.subf %192, %197 : vector<8x16xf32>
    %199 = vector.broadcast %196 : vector<1x16xf32> to vector<8x16xf32>
    %200 = arith.subf %192, %199 : vector<8x16xf32>
    %201 = arith.mulf %198, %200 : vector<8x16xf32>
    %cst_54 = arith.constant dense<0.000000e+00> : vector<16xf32>
    %202 = vector.multi_reduction <add>, %201, %cst_54 [0] : vector<8x16xf32> to vector<16xf32>
    %203 = vector.shape_cast %202 : vector<16xf32> to vector<1x16xf32>
    %cst_55 = arith.constant 8.000000e+00 : f32
    %204 = vector.broadcast %cst_55 : f32 to vector<1x16xf32>
    %205 = arith.divf %203, %204 : vector<1x16xf32>
    %206 = vector.broadcast %196 : vector<1x16xf32> to vector<8x16xf32>
    %207 = arith.subf %192, %206 : vector<8x16xf32>
    %cst_56 = arith.constant 9.99999974E-6 : f32
    %208 = vector.broadcast %cst_56 : f32 to vector<1x16xf32>
    %209 = arith.addf %205, %208 : vector<1x16xf32>
    %210 = math.rsqrt %209 : vector<1x16xf32>
    %211 = vector.broadcast %210 : vector<1x16xf32> to vector<8x16xf32>
    %212 = arith.mulf %207, %211 : vector<8x16xf32>
    %213 = vector.broadcast %188 : vector<1x16xf32> to vector<8x16xf32>
    %214 = arith.mulf %212, %213 : vector<8x16xf32>
    %215 = vector.broadcast %189 : vector<1x16xf32> to vector<8x16xf32>
    %216 = arith.addf %214, %215 : vector<8x16xf32>
    %cst_57 = arith.constant 0.000000e+00 : f32
    %217 = vector.broadcast %cst_57 : f32 to vector<8x16xf32>
    %218 = arith.maximumf %216, %217 : vector<8x16xf32>
    %c136 = arith.constant 136 : index
    %c0_58 = arith.constant 0 : index
    %219 = vector.load %arg1[%c136, %c0_58] : memref<176x128xf32, #tpu.memory_space<vmem>>, vector<16x8xf32>
    %c166 = arith.constant 166 : index
    %c0_59 = arith.constant 0 : index
    %220 = vector.load %arg1[%c166, %c0_59] : memref<176x128xf32, #tpu.memory_space<vmem>>, vector<1x8xf32>
    %c167 = arith.constant 167 : index
    %c0_60 = arith.constant 0 : index
    %221 = vector.load %arg1[%c167, %c0_60] : memref<176x128xf32, #tpu.memory_space<vmem>>, vector<1x8xf32>
    %c168 = arith.constant 168 : index
    %c0_61 = arith.constant 0 : index
    %222 = vector.load %arg1[%c168, %c0_61] : memref<176x128xf32, #tpu.memory_space<vmem>>, vector<1x8xf32>
    %cst_62 = arith.constant dense<0.000000e+00> : vector<8x8xf32>
    %223 = tpu.matmul %218, %219, %cst_62 {dimension_numbers = #tpu.dot_dimension_numbers<[1], [0], [0], [1], [0, 0, 1, 1], [], []>} : vector<8x16xf32>, vector<16x8xf32>, vector<8x8xf32> -> vector<8x8xf32>
    %224 = vector.broadcast %220 : vector<1x8xf32> to vector<8x8xf32>
    %225 = arith.addf %223, %224 : vector<8x8xf32>
    %cst_63 = arith.constant dense<0.000000e+00> : vector<8xf32>
    %226 = vector.multi_reduction <add>, %225, %cst_63 [0] : vector<8x8xf32> to vector<8xf32>
    %227 = vector.shape_cast %226 : vector<8xf32> to vector<1x8xf32>
    %cst_64 = arith.constant 8.000000e+00 : f32
    %228 = vector.broadcast %cst_64 : f32 to vector<1x8xf32>
    %229 = arith.divf %227, %228 : vector<1x8xf32>
    %230 = vector.broadcast %229 : vector<1x8xf32> to vector<8x8xf32>
    %231 = arith.subf %225, %230 : vector<8x8xf32>
    %232 = vector.broadcast %229 : vector<1x8xf32> to vector<8x8xf32>
    %233 = arith.subf %225, %232 : vector<8x8xf32>
    %234 = arith.mulf %231, %233 : vector<8x8xf32>
    %cst_65 = arith.constant dense<0.000000e+00> : vector<8xf32>
    %235 = vector.multi_reduction <add>, %234, %cst_65 [0] : vector<8x8xf32> to vector<8xf32>
    %236 = vector.shape_cast %235 : vector<8xf32> to vector<1x8xf32>
    %cst_66 = arith.constant 8.000000e+00 : f32
    %237 = vector.broadcast %cst_66 : f32 to vector<1x8xf32>
    %238 = arith.divf %236, %237 : vector<1x8xf32>
    %239 = vector.broadcast %229 : vector<1x8xf32> to vector<8x8xf32>
    %240 = arith.subf %225, %239 : vector<8x8xf32>
    %cst_67 = arith.constant 9.99999974E-6 : f32
    %241 = vector.broadcast %cst_67 : f32 to vector<1x8xf32>
    %242 = arith.addf %238, %241 : vector<1x8xf32>
    %243 = math.rsqrt %242 : vector<1x8xf32>
    %244 = vector.broadcast %243 : vector<1x8xf32> to vector<8x8xf32>
    %245 = arith.mulf %240, %244 : vector<8x8xf32>
    %246 = vector.broadcast %221 : vector<1x8xf32> to vector<8x8xf32>
    %247 = arith.mulf %245, %246 : vector<8x8xf32>
    %248 = vector.broadcast %222 : vector<1x8xf32> to vector<8x8xf32>
    %249 = arith.addf %247, %248 : vector<8x8xf32>
    %cst_68 = arith.constant 0.000000e+00 : f32
    %250 = vector.broadcast %cst_68 : f32 to vector<8x8xf32>
    %251 = arith.maximumf %249, %250 : vector<8x8xf32>
    %c152 = arith.constant 152 : index
    %c0_69 = arith.constant 0 : index
    %252 = vector.load %arg1[%c152, %c0_69] : memref<176x128xf32, #tpu.memory_space<vmem>>, vector<8x128xf32>
    %cst_70 = arith.constant dense<0.000000e+00> : vector<8x128xf32>
    %253 = tpu.matmul %251, %252, %cst_70 {dimension_numbers = #tpu.dot_dimension_numbers<[1], [0], [0], [1], [0, 0, 1, 1], [], []>} : vector<8x8xf32>, vector<8x128xf32>, vector<8x128xf32> -> vector<8x128xf32>
    %c0_71 = arith.constant 0 : index
    %c0_72 = arith.constant 0 : index
    %254 = vector.load %arg2[%c0_71, %c0_72] : memref<8x1xf32, #tpu.memory_space<vmem>>, vector<8x1xf32>
    %c169 = arith.constant 169 : index
    %c0_73 = arith.constant 0 : index
    %255 = vector.load %arg1[%c169, %c0_73] : memref<176x128xf32, #tpu.memory_space<vmem>>, vector<1x128xf32>
    %256 = vector.broadcast %254 : vector<8x1xf32> to vector<8x128xf32>
    %257 = vector.broadcast %255 : vector<1x128xf32> to vector<8x128xf32>
    %258 = arith.mulf %256, %257 : vector<8x128xf32>
    %259 = arith.addf %253, %258 : vector<8x128xf32>
    %c170 = arith.constant 170 : index
    %c0_74 = arith.constant 0 : index
    %260 = vector.load %arg1[%c170, %c0_74] : memref<176x128xf32, #tpu.memory_space<vmem>>, vector<1x128xf32>
    %261 = vector.broadcast %260 : vector<1x128xf32> to vector<8x128xf32>
    %262 = arith.addf %259, %261 : vector<8x128xf32>
    %c0_75 = arith.constant 0 : index
    %c0_76 = arith.constant 0 : index
    %263 = vector.load %arg3[%c0_75, %c0_76] : memref<8x128xf32, #tpu.memory_space<vmem>>, vector<8x128xf32>
    tpu.vector_store %arg3[%c0_75, %c0_76], %262 {strides = array<i32>} : memref<8x128xf32, #tpu.memory_space<vmem>>, vector<8x128xf32>,
    return
  }
}

</mosaic_0001>

<bundles_post_ra>
// kernel: forward.1
= control target key start
LH: loop header
LB: loop body
LE: loop exit
PB: predicated region body
PF: predicated region fallthrough
CT: control target
= control target key end

     0   :  { %8 = vsyncpa [#allocation3], 0  ;;  %s1828_s0 = inlined_call_operand.hbm [shape: f32[4,8,32], index: 0, kind: input, shape index: {}]   ;;  %s1829_s1 = inlined_call_operand.hbm [shape: f32[176,128], index: 1, kind: input, shape index: {}]   ;;  %s1830_s2 = inlined_call_operand.vmem [shape: f32[8,1], index: 2, kind: input, shape index: {}]   ;;  %s1831_s3 = inlined_call_operand.vmem [shape: f32[8,128], index: 3, kind: output, shape index: {}]  }
   0x1   :  { %9 = vsyncpa [#allocation5], 0  ;;  %s1586_s12 = smov [#allocation2]  }
   0x2   :  { %s15_s13 = sshll.u32 %s1586_s12, 4  ;;  %s16_s13 = int_to_ptr.vmem [resolvable:$true] %s15_s13 }
   0x3   :  { %s1550_s14 = scalar_lea.vmem %s16_s13, 512  ;;  %p1555_p1 = scmp.lt.s32.totalorder %s16_s13, %s16_s13 }
   0x4   :  { %p1551_p0 = scmp.ne.s32.totalorder %s16_s13, %s1550_s14  ;;  %p1556_p2 = scmp.lt.s32.totalorder %s1550_s14, %s1550_s14 }
   0x6   :  { %p1557_p3 = por %p1556_p2, %p1555_p1 }
   0x8   :  { %p1558_p4 = pnand %p1557_p3, %p1551_p0 }
   0xa   :  { %1561 = shalt.err (!%p1558_p4)
}
   0xb   :  { %s1587_s15 = smov 128   ;;  %s1588_s16 = smov 8  }
   0xc   :  { %21 = dma.hbm_to_vmem [thread:$0]  %s1828_s0, 512, %s16_s13, [#allocation3], %s1587_s15, %s1587_s15, %s1588_s16  }
   0xd   :  { %s1589_s19 = smov [#allocation4]  }
   0xe   :  { %s27_s20 = sshll.u32 %s1589_s19, 4  ;;  %s28_s20 = int_to_ptr.vmem [resolvable:$true] %s27_s20 }
   0xf   :  { %s1570_s21 = scalar_lea.vmem %s28_s20, 2816  ;;  %p1575_p6 = scmp.lt.s32.totalorder %s28_s20, %s28_s20 }
  0x10   :  { %p1571_p5 = scmp.ne.s32.totalorder %s28_s20, %s1570_s21  ;;  %p1576_p7 = scmp.lt.s32.totalorder %s1570_s21, %s1570_s21 }
  0x12   :  { %p1577_p8 = por %p1576_p7, %p1575_p6 }
  0x14   :  { %p1578_p9 = pnand %p1577_p8, %p1571_p5 }
  0x16   :  { %1581 = shalt.err (!%p1578_p9)
}
  0x17   :  { %33 = dma.hbm_to_vmem [thread:$0]  %s1829_s1, 2816, %s28_s20, [#allocation5], %s1587_s15, %s1587_s15, %s1588_s16  }
  0x18   :  { %1582 = dma.done.wait [#allocation3], 512  }
  0x19   :  { %1583 = vsyncadd [#allocation3], 4294966784 }
  0x1a   :  { %1584 = dma.done.wait [#allocation5], 2816  }
  0x1b   :  { %1585 = vsyncadd [#allocation5], 4294964480  ;;  %v1590_v0 = vmov 0.0   ;;  %vm1591_vm0 = vmmov 0   ;;  %v1627_v1 = vld [vmem:[#allocation4 + $0x18] sm:$0xff]  ;;  %v1629_v2 = vld [vmem:[#allocation4 + $0x10] sm:$0xff] }
  0x1c   :  { %1348 = vmatprep.subr.mxu0 %v1590_v0  ;;  %1356 = vmatprep.mubr.msk.f32.mxu0 %vm1591_vm0, %v1590_v0  ;;  %v1633_v3 = vld [vmem:[#allocation4 + $0x8] sm:$0xff]  ;;  %v1637_v4 = vld [vmem:[#allocation4] sm:$0xff]  ;;  %vm58_vm1 = vcmask 261120   ;;  %v1657_v11 = vld [vmem:[#allocation4 + $0x38] sm:$0xff]  ;;  %s1592_s0 = smov 96   ;;  %s1593_s1 = smov 32  }
  0x1d   :  { %1359 = vmatprep.subr.mxu1 %v1590_v0  ;;  %1367 = vmatprep.mubr.msk.f32.mxu1 %vm1591_vm0, %v1590_v0  ;;  %v52_v5 = vld [vmem:[#allocation2] sm:$0xff]  ;;  %v1659_v12 = vld [vmem:[#allocation4 + $0x30] sm:$0xff]  ;;  %v1663_v13 = vld [vmem:[#allocation4 + $0x28] sm:$0xff]  ;;  %vm1013_vm2 = vcmask 130048   ;;  %vm1128_vm3 = vcmask 64512  }
  0x1e   :  { %1349 = vmatpush3.msra.mxu0 %v1627_v1  ;;  %v1654_v6 = vld [vmem:[#allocation4 + $0x40] ss:$0 sm:$0xff]  ;;  %1360 = vmatpush3.msra.mxu1 %v1657_v11  ;;  %v1690_v24 = vld [vmem:[#allocation4 + $0x41] ss:$0 sm:$0xff]  ;;  %v247_v34 = vld [vmem:[#allocation2 + $0x8] sm:$0xff] }
  0x1f   :  { %1350 = vmatprep.subr.mxu0 %v1590_v0  ;;  %1361 = vmatprep.subr.mxu1 %v1590_v0  ;;  %v1670_v17 = vld [vmem:[#allocation4 + $0x20] sm:$0xff] }
  0x20   :  { %1351 = vmatpush3.msra.mxu0 %v1629_v2  ;;  %1362 = vmatpush3.msra.mxu1 %v1659_v12 }
  0x21   :  { %1352 = vmatprep.subr.mxu0 %v1590_v0  ;;  %1363 = vmatprep.subr.mxu1 %v1590_v0 }
  0x22   :  { %1353 = vmatpush3.msra.mxu0 %v1633_v3  ;;  %1364 = vmatpush3.msra.mxu1 %v1663_v13 }
  0x23   :  { %1354 = vmatprep.subr.mxu0 %v1590_v0  ;;  %1365 = vmatprep.subr.mxu1 %v1590_v0 }
  0x24   :  { %1355 = vmatpush3.msra.mxu0 %v1637_v4  ;;  %1366 = vmatpush3.msra.mxu1 %v1670_v17 }
  0x25   :  { %1357 = vmatmul.mubr.msk.f32.vlgmr.msra.gmra.mxu0 %vm58_vm1, %v52_v5  ;;  %1370 = vmatprep.subr.mxu0 %v1590_v0 }
  0x26   :  { %1371 = vmatpush3.msra.mxu0 %v1627_v1  ;;  %1378 = vmatprep.mubr.msk.f32.mxu0 %vm1591_vm0, %v1590_v0 }
  0x27   :  { %1372 = vmatprep.subr.mxu0 %v1590_v0  ;;  %1381 = vmatprep.subr.mxu1 %v1590_v0 }
  0x28   :  { %1373 = vmatpush3.msra.mxu0 %v1629_v2 }
  0x29   :  { %1374 = vmatprep.subr.mxu0 %v1590_v0 }
  0x2a   :  { %1375 = vmatpush3.msra.mxu0 %v1633_v3 }
  0x2b   :  { %1376 = vmatprep.subr.mxu0 %v1590_v0 }
  0x2c   :  { %1377 = vmatpush3.msra.mxu0 %v1637_v4 }
  0x2d   :  { %1392 = vmatprep.subr.mxu0 %v1590_v0 }
  0xe5   :  { %v128_v7 = vpop.f32.mrf.mxu0 }
  0xe6   :  { %v129_v8 = vadd.f32 %v1654_v6, %v128_v7 }
  0xe7   :  { %v1358_v9 = vpop.f32.mrf.mxu0 }
  0xe8   :  { %v1262_v10 = vmul.f32 -1.442695, %v129_v8  ;;  %1480 = vtanh.f32 %v129_v8  ;;  %v445_v8 = vld [vmem:[#allocation2 + $0x10] sm:$0xff] }
  0xea   :  { %1482 = vpow2.f32 %v1262_v10 }
  0xf5   :  { %v1481_v14 = vpop.eup %1480 }
  0xf6   :  { %139 = vrot.lane.b32.xlu1 %v1481_v14, %s1592_s0 }
  0xf7   :  { %v1483_v15 = vpop.eup %1482 }
  0xf8   :  { %v135_v16 = vadd.f32 1.0, %v1483_v15 }
  0xfa   :  { %1484 = vrcp.f32 %v135_v16 }
 0x107   :  { %v1485_v18 = vpop.eup %1484 }
 0x108   :  { %v1674_v19 = vmul.f32 0.0, %v1485_v18 }
 0x10a   :  { %149 = vrot.lane.b32.xlu0 %v1674_v19, %s1593_s1 }
 0x168   :  { %v140_v20 = vpop.permute.xlu1 %139 }
 0x169   :  { %v141_v21 = vmul.f32 %v1485_v18, %v140_v20 }
 0x16b   :  { %144 = vrot.lane.b32.xlu1 %v141_v21, %s1592_s0 }
 0x17c   :  { %v150_v22 = vpop.permute.xlu0 %149 }
 0x17d   :  { %v152_v23 = vadd.f32 %v150_v22, %v52_v5 }
 0x17f   :  { %1368 = vmatmul.mubr.msk.f32.vlgmr.msra.gmra.mxu1 %vm58_vm1, %v152_v23 }
 0x180   :  { %1382 = vmatpush3.msra.mxu1 %v1657_v11  ;;  %1389 = vmatprep.mubr.msk.f32.mxu1 %vm1591_vm0, %v1590_v0 }
 0x181   :  { %1383 = vmatprep.subr.mxu1 %v1590_v0 }
 0x182   :  { %1384 = vmatpush3.msra.mxu1 %v1659_v12 }
 0x183   :  { %1385 = vmatprep.subr.mxu1 %v1590_v0 }
 0x184   :  { %1386 = vmatpush3.msra.mxu1 %v1663_v13 }
 0x185   :  { %1387 = vmatprep.subr.mxu1 %v1590_v0 }
 0x186   :  { %1388 = vmatpush3.msra.mxu1 %v1670_v17 }
 0x187   :  { %1403 = vmatprep.subr.mxu1 %v1590_v0 }
 0x1dd   :  { %v145_v43 = vpop.permute.xlu1 %144 }
 0x1de   :  { %v1717_v48 = vadd.f32 %v145_v43, %v1674_v19 }
 0x23f   :  { %v226_v25 = vpop.f32.mrf.mxu1 }
 0x240   :  { %v227_v26 = vadd.f32 %v1690_v24, %v226_v25 }
 0x241   :  { %v1369_v27 = vpop.f32.mrf.mxu1 }
 0x242   :  { %v1265_v28 = vmul.f32 -1.442695, %v227_v26  ;;  %1486 = vtanh.f32 %v227_v26 }
 0x244   :  { %1488 = vpow2.f32 %v1265_v28 }
 0x24f   :  { %v1487_v29 = vpop.eup %1486 }
 0x250   :  { %237 = vrot.lane.b32.xlu1 %v1487_v29, %s1592_s0 }
 0x251   :  { %v1489_v30 = vpop.eup %1488 }
 0x252   :  { %v233_v31 = vadd.f32 1.0, %v1489_v30 }
 0x254   :  { %1490 = vrcp.f32 %v233_v31 }
 0x261   :  { %v1491_v32 = vpop.eup %1490 }
 0x262   :  { %v1694_v33 = vmul.f32 0.0, %v1491_v32 }
 0x264   :  { %249 = vrot.lane.b32.xlu0 %v1694_v33, %s1593_s1 }
 0x2c2   :  { %v238_v45 = vpop.permute.xlu1 %237 }
 0x2c3   :  { %v239_v46 = vmul.f32 %v1491_v32, %v238_v45 }
 0x2d6   :  { %v250_v35 = vpop.permute.xlu0 %249 }
 0x2d7   :  { %v252_v36 = vadd.f32 %v250_v35, %v247_v34 }
 0x2d9   :  { %1379 = vmatmul.mubr.msk.f32.vlgmr.msra.gmra.mxu0 %vm58_vm1, %v252_v36 }
 0x2da   :  { %1393 = vmatpush3.msra.mxu0 %v1627_v1  ;;  %1400 = vmatprep.mubr.msk.f32.mxu0 %vm1591_vm0, %v1590_v0 }
 0x2db   :  { %1394 = vmatprep.subr.mxu0 %v1590_v0 }
 0x2dc   :  { %1395 = vmatpush3.msra.mxu0 %v1629_v2 }
 0x2dd   :  { %1396 = vmatprep.subr.mxu0 %v1590_v0 }
 0x2de   :  { %1397 = vmatpush3.msra.mxu0 %v1633_v3 }
 0x2df   :  { %1398 = vmatprep.subr.mxu0 %v1590_v0 }
 0x2e0   :  { %1399 = vmatpush3.msra.mxu0 %v1637_v4 }
 0x2e1   :  { %1414 = vmatprep.subr.mxu0 %v1590_v0 }
 0x399   :  { %v322_v37 = vpop.f32.mrf.mxu0 }
 0x39a   :  { %v323_v38 = vadd.f32 %v1654_v6, %v322_v37 }
 0x39b   :  { %v1380_v39 = vpop.f32.mrf.mxu0 }
 0x39c   :  { %v1267_v40 = vmul.f32 -1.442695, %v323_v38 }
 0x39e   :  { %1492 = vpow2.f32 %v1267_v40  ;;  %v639_v40 = vld [vmem:[#allocation2 + $0x18] sm:$0xff] }
 0x3ab   :  { %v1493_v41 = vpop.eup %1492 }
 0x3ac   :  { %v329_v42 = vadd.f32 1.0, %v1493_v41 }
 0x3ae   :  { %1494 = vrcp.f32 %v329_v42 }
 0x3af   :  { %1496 = vtanh.f32 %v323_v38 }
 0x3b0   :  { %1498 = vtanh.f32 %v1717_v48 }
 0x3bb   :  { %v1710_v44 = vpop.eup %1494 }
 0x3bc   :  { %338 = vrot.lane.b32.xlu0 %v1710_v44, %s1593_s1  ;;  %v1497_v47 = vpop.eup %1496  ;;  %v342_v23 = vmul.f32 %v1710_v44, %v1717_v48 }
 0x3bd   :  { %v1499_v49 = vpop.eup %1498 }
 0x3c0   :  { %242 = vrot.lane.b32.xlu0 %v239_v46, %s1592_s0 }
 0x3c4   :  { %333 = vrot.lane.b32.xlu0 %v1497_v47, %s1592_s0 }
 0x42e   :  { %v339_v50 = vpop.permute.xlu0 %338 }
 0x42f   :  { %v341_v51 = vmul.f32 %v1499_v49, %v339_v50 }
 0x431   :  { %v348_v52 = vadd.f32 %v341_v51, %v247_v34 }
 0x432   :  { %v243_v59 = vpop.permute.xlu0 %242 }
 0x433   :  { %1390 = vmatmul.mubr.msk.f32.vlgmr.msra.gmra.mxu1 %vm58_vm1, %v348_v52  ;;  %v1740_v5 = vadd.f32 %v243_v59, %v1694_v33  ;;  %v815_v59 = vld [vmem:[#allocation4 + $0x60] sm:$0xff] }
 0x434   :  { %1404 = vmatpush3.msra.mxu1 %v1657_v11  ;;  %1411 = vmatprep.mubr.msk.f32.mxu1 %vm1591_vm0, %v1590_v0 }
 0x435   :  { %1405 = vmatprep.subr.mxu1 %v1590_v0 }
 0x436   :  { %1406 = vmatpush3.msra.mxu1 %v1659_v12  ;;  %v334_v61 = vpop.permute.xlu0 %333 }
 0x437   :  { %1407 = vmatprep.subr.mxu1 %v1590_v0  ;;  %v335_v62 = vmul.f32 %v1710_v44, %v334_v61  ;;  %v813_v61 = vld [vmem:[#allocation4 + $0x50] sm:$0xff] }
 0x438   :  { %1408 = vmatpush3.msra.mxu1 %v1663_v13 }
 0x439   :  { %1409 = vmatprep.subr.mxu1 %v1590_v0 }
 0x43a   :  { %1410 = vmatpush3.msra.mxu1 %v1670_v17 }
 0x43b   :  { %1425 = vmatprep.subr.mxu1 %v1590_v0 }
 0x4f3   :  { %v418_v53 = vpop.f32.mrf.mxu1 }
 0x4f4   :  { %v419_v54 = vadd.f32 %v1690_v24, %v418_v53 }
 0x4f5   :  { %v1391_v55 = vpop.f32.mrf.mxu1 }
 0x4f6   :  { %v1269_v56 = vmul.f32 -1.442695, %v419_v54 }
 0x4f8   :  { %1500 = vpow2.f32 %v1269_v56 }
 0x505   :  { %v1501_v57 = vpop.eup %1500 }
 0x506   :  { %v425_v58 = vadd.f32 1.0, %v1501_v57 }
 0x508   :  { %1502 = vrcp.f32 %v425_v58 }
 0x509   :  { %1504 = vtanh.f32 %v419_v54 }
 0x50a   :  { %1506 = vtanh.f32 %v1740_v5 }
 0x515   :  { %v1732_v60 = vpop.eup %1502 }
 0x516   :  { %434 = vrot.lane.b32.xlu1 %v1732_v60, %s1593_s1  ;;  %v1505_v63 = vpop.eup %1504  ;;  %v438_v37 = vmul.f32 %v1732_v60, %v1740_v5 }
 0x517   :  { %v1507_v7 = vpop.eup %1506 }
 0x51a   :  { %344 = vrot.lane.b32.xlu1 %v335_v62, %s1592_s0 }
 0x51e   :  { %429 = vrot.lane.b32.xlu1 %v1505_v63, %s1592_s0 }
 0x588   :  { %v435_v9 = vpop.permute.xlu1 %434 }
 0x589   :  { %v437_v10 = vmul.f32 %v1507_v7, %v435_v9 }
 0x58b   :  { %v446_v14 = vadd.f32 %v445_v8, %v437_v10  ;;  %v812_v10 = vld [vmem:[#allocation4 + $0x48] sm:$0xff] }
 0x58d   :  { %1401 = vmatmul.mubr.msk.f32.vlgmr.msra.gmra.mxu0 %vm58_vm1, %v446_v14 }
 0x58e   :  { %1415 = vmatpush3.msra.mxu0 %v1627_v1  ;;  %1422 = vmatprep.mubr.msk.f32.mxu0 %vm1591_vm0, %v1590_v0 }
 0x58f   :  { %1416 = vmatprep.subr.mxu0 %v1590_v0 }
 0x590   :  { %1417 = vmatpush3.msra.mxu0 %v1629_v2  ;;  %v345_v2 = vpop.permute.xlu1 %344 }
 0x591   :  { %1418 = vmatprep.subr.mxu0 %v1590_v0  ;;  %v347_v25 = vadd.f32 %v345_v2, %v342_v23  ;;  %v931_v2 = vld [vmem:[#allocation4 + $0x78] sm:$0xff] }
 0x592   :  { %1419 = vmatpush3.msra.mxu0 %v1633_v3 }
 0x593   :  { %1420 = vmatprep.subr.mxu0 %v1590_v0 }
 0x594   :  { %1421 = vmatpush3.msra.mxu0 %v1637_v4  ;;  %v430_v3 = vpop.permute.xlu1 %429 }
 0x595   :  { %1436 = vmatprep.subr.mxu0 %v1590_v0  ;;  %v431_v4 = vmul.f32 %v1732_v60, %v430_v3  ;;  %v814_v60 = vld [vmem:[#allocation4 + $0x58] sm:$0xff]  ;;  %v929_v3 = vld [vmem:[#allocation4 + $0x68] sm:$0xff] }
 0x64d   :  { %v516_v15 = vpop.f32.mrf.mxu0 }
 0x64e   :  { %v517_v1 = vadd.f32 %v1654_v6, %v516_v15 }
 0x64f   :  { %v1402_v16 = vpop.f32.mrf.mxu0 }
 0x650   :  { %v1271_v18 = vmul.f32 -1.442695, %v517_v1 }
 0x652   :  { %1508 = vpow2.f32 %v1271_v18 }
 0x65f   :  { %v1509_v19 = vpop.eup %1508 }
 0x660   :  { %v523_v20 = vadd.f32 1.0, %v1509_v19 }
 0x662   :  { %1510 = vrcp.f32 %v523_v20  ;;  %v932_v20 = vld [vmem:[#allocation4 + $0x80] sm:$0xff] }
 0x663   :  { %1512 = vtanh.f32 %v517_v1 }
 0x664   :  { %1514 = vtanh.f32 %v347_v25 }
 0x66f   :  { %v1755_v21 = vpop.eup %1510 }
 0x670   :  { %532 = vrot.lane.b32.xlu0 %v1755_v21, %s1593_s1  ;;  %v1513_v22 = vpop.eup %1512  ;;  %v536_v54 = vmul.f32 %v1755_v21, %v347_v25 }
 0x671   :  { %v1515_v26 = vpop.eup %1514 }
 0x674   :  { %440 = vrot.lane.b32.xlu0 %v431_v4, %s1592_s0  ;;  %v1278_v4 = vld [vmem:[#allocation4 + $0xa0] ss:$0 sm:$0xff] }
 0x678   :  { %527 = vrot.lane.b32.xlu0 %v1513_v22, %s1592_s0 }
 0x6e2   :  { %v533_v27 = vpop.permute.xlu0 %532 }
 0x6e3   :  { %v535_v28 = vmul.f32 %v1515_v26, %v533_v27 }
 0x6e5   :  { %v542_v29 = vadd.f32 %v535_v28, %v445_v8 }
 0x6e7   :  { %1412 = vmatmul.mubr.msk.f32.vlgmr.msra.gmra.mxu1 %vm58_vm1, %v542_v29 }
 0x6e8   :  { %1426 = vmatpush3.msra.mxu1 %v1657_v11  ;;  %1433 = vmatprep.mubr.msk.f32.mxu1 %vm1591_vm0, %v1590_v0 }
 0x6e9   :  { %1427 = vmatprep.subr.mxu1 %v1590_v0 }
 0x6ea   :  { %1428 = vmatpush3.msra.mxu1 %v1659_v12  ;;  %v441_v12 = vpop.permute.xlu0 %440 }
 0x6eb   :  { %1429 = vmatprep.subr.mxu1 %v1590_v0  ;;  %v443_v38 = vadd.f32 %v441_v12, %v438_v37 }
 0x6ec   :  { %1430 = vmatpush3.msra.mxu1 %v1663_v13 }
 0x6ed   :  { %1431 = vmatprep.subr.mxu1 %v1590_v0 }
 0x6ee   :  { %1432 = vmatpush3.msra.mxu1 %v1670_v17  ;;  %v528_v13 = vpop.permute.xlu0 %527 }
 0x6ef   :  { %1447 = vmatprep.subr.mxu1 %v1590_v0  ;;  %v529_v17 = vmul.f32 %v1755_v21, %v528_v13  ;;  %v930_v21 = vld [vmem:[#allocation4 + $0x70] sm:$0xff] }
 0x7a7   :  { %v612_v30 = vpop.f32.mrf.mxu1 }
 0x7a8   :  { %v613_v11 = vadd.f32 %v1690_v24, %v612_v30 }
 0x7a9   :  { %v1413_v31 = vpop.f32.mrf.mxu1 }
 0x7aa   :  { %v1273_v32 = vmul.f32 -1.442695, %v613_v11 }
 0x7ac   :  { %1516 = vpow2.f32 %v1273_v32 }
 0x7b9   :  { %v1517_v33 = vpop.eup %1516 }
 0x7ba   :  { %v619_v34 = vadd.f32 1.0, %v1517_v33 }
 0x7bc   :  { %1518 = vrcp.f32 %v619_v34 }
 0x7bd   :  { %1520 = vtanh.f32 %v613_v11 }
 0x7be   :  { %1522 = vtanh.f32 %v443_v38 }
 0x7c9   :  { %v1776_v35 = vpop.eup %1518 }
 0x7ca   :  { %628 = vrot.lane.b32.xlu1 %v1776_v35, %s1593_s1  ;;  %v1521_v36 = vpop.eup %1520  ;;  %v632_v1 = vmul.f32 %v1776_v35, %v443_v38 }
 0x7cb   :  { %v1523_v39 = vpop.eup %1522 }
 0x7ce   :  { %538 = vrot.lane.b32.xlu1 %v529_v17, %s1592_s0 }
 0x7d2   :  { %623 = vrot.lane.b32.xlu1 %v1521_v36, %s1592_s0 }
 0x83c   :  { %v629_v41 = vpop.permute.xlu1 %628 }
 0x83d   :  { %v631_v42 = vmul.f32 %v1523_v39, %v629_v41 }
 0x83f   :  { %v640_v43 = vadd.f32 %v639_v40, %v631_v42  ;;  %v1280_v42 = vld [vmem:[#allocation4 + $0xa1] ss:$0 sm:$0xff] }
 0x840   :  { %v539_v50 = vpop.permute.xlu1 %538 }
 0x841   :  { %1423 = vmatmul.mubr.msk.f32.vlgmr.msra.gmra.mxu0 %vm58_vm1, %v640_v43  ;;  %v541_v55 = vadd.f32 %v539_v50, %v536_v54  ;;  %v1282_v50 = vld [vmem:[#allocation4 + $0xa3] ss:$0 sm:$0xff] }
 0x842   :  { %1444 = vmatprep.mubr.msk.f32.mxu0 %vm1591_vm0, %v1590_v0  ;;  %1437 = vmatpush3.msra.mxu0 %v815_v59 }
 0x843   :  { %1438 = vmatprep.subr.mxu0 %v1590_v0 }
 0x844   :  { %v624_v52 = vpop.permute.xlu1 %623  ;;  %1439 = vmatpush3.msra.mxu0 %v814_v60 }
 0x845   :  { %v625_v53 = vmul.f32 %v1776_v35, %v624_v52  ;;  %1440 = vmatprep.subr.mxu0 %v1590_v0 }
 0x846   :  { %1441 = vmatpush3.msra.mxu0 %v813_v61 }
 0x847   :  { %1442 = vmatprep.subr.mxu0 %v1590_v0 }
 0x848   :  { %1443 = vmatpush3.msra.mxu0 %v812_v10 }
 0x849   :  { %1458 = vmatprep.subr.mxu0 %v1590_v0 }
 0x901   :  { %v710_v44 = vpop.f32.mrf.mxu0 }
 0x902   :  { %v711_v45 = vadd.f32 %v1654_v6, %v710_v44  ;;  %v1281_v44 = vld [vmem:[#allocation4 + $0xa2] ss:$0 sm:$0xff] }
 0x903   :  { %v1424_v46 = vpop.f32.mrf.mxu0 }
 0x904   :  { %v1275_v47 = vmul.f32 -1.442695, %v711_v45 }
 0x906   :  { %1524 = vpow2.f32 %v1275_v47 }
 0x913   :  { %v1525_v48 = vpop.eup %1524 }
 0x914   :  { %v717_v49 = vadd.f32 1.0, %v1525_v48  ;;  %v1047_v48 = vld [vmem:[#allocation4 + $0x90] sm:$0xff] }
 0x916   :  { %1526 = vrcp.f32 %v717_v49  ;;  %v1046_v49 = vld [vmem:[#allocation4 + $0x88] sm:$0xff] }
 0x917   :  { %1528 = vtanh.f32 %v541_v55 }
 0x923   :  { %v1527_v51 = vpop.eup %1526 }
 0x924   :  { %722 = vrot.lane.b32.xlu0 %v1527_v51, %s1593_s1  ;;  %v1529_v6 = vpop.eup %1528 }
 0x928   :  { %634 = vrot.lane.b32.xlu0 %v625_v53, %s1592_s0 }
 0x996   :  { %v723_v56 = vpop.permute.xlu0 %722 }
 0x997   :  { %v725_v57 = vmul.f32 %v1529_v6, %v723_v56 }
 0x999   :  { %v726_v58 = vadd.f32 %v725_v57, %v639_v40 }
 0x99a   :  { %v635_v15 = vpop.permute.xlu0 %634 }
 0x99b   :  { %1434 = vmatmul.mubr.msk.f32.vlgmr.msra.gmra.mxu1 %vm58_vm1, %v726_v58  ;;  %v637_v16 = vadd.f32 %v635_v15, %v632_v1 }
 0x99c   :  { %1455 = vmatprep.mubr.msk.f32.mxu1 %vm1591_vm0, %v1590_v0  ;;  %1448 = vmatpush3.msra.mxu1 %v932_v20 }
 0x99d   :  { %1449 = vmatprep.subr.mxu1 %v1590_v0 }
 0x99e   :  { %1450 = vmatpush3.msra.mxu1 %v931_v2 }
 0x99f   :  { %1451 = vmatprep.subr.mxu1 %v1590_v0 }
 0x9a0   :  { %1452 = vmatpush3.msra.mxu1 %v930_v21  ;;  %v1161_v21 = vld [vmem:[#allocation4 + $0x98] sm:$0xff] }
 0x9a1   :  { %1453 = vmatprep.subr.mxu1 %v1590_v0 }
 0x9a2   :  { %1454 = vmatpush3.msra.mxu1 %v929_v3  ;;  %v1162_v3 = vld [vmem:[%s1830_s2] sm:$0xff] }
 0x9a3   :  { %1465 = vmatprep.subr.mxu1 %v1590_v0 }
 0xa5b   :  { %v796_v62 = vpop.f32.mrf.mxu1 }
 0xa5c   :  { %v797_v63 = vadd.f32 %v1690_v24, %v796_v62 }
 0xa5d   :  { %v1435_v5 = vpop.f32.mrf.mxu1 }
 0xa5e   :  { %v1277_v7 = vmul.f32 -1.442695, %v797_v63 }
 0xa60   :  { %1530 = vpow2.f32 %v1277_v7 }
 0xa6d   :  { %v1531_v8 = vpop.eup %1530 }
 0xa6e   :  { %v803_v9 = vadd.f32 1.0, %v1531_v8 }
 0xa70   :  { %1532 = vrcp.f32 %v803_v9 }
 0xa71   :  { %1534 = vtanh.f32 %v637_v16  ;;  %v1284_v16 = vld [vmem:[#allocation4 + $0xa4] ss:$0 sm:$0xff] }
 0xa7d   :  { %v1533_v14 = vpop.eup %1532 }
 0xa7e   :  { %808 = vrot.lane.b32.xlu1 %v1533_v14, %s1593_s1  ;;  %v1535_v18 = vpop.eup %1534 }
 0xaf0   :  { %v809_v24 = vpop.permute.xlu1 %808 }
 0xaf1   :  { %v811_v19 = vmul.f32 %v1535_v18, %v809_v24  ;;  %v1285_v24 = vld [vmem:[#allocation4 + $0xa5] ss:$0 sm:$0xff] }
 0xaf3   :  { %1445 = vmatmul.mubr.msk.f32.vlgmr.msra.gmra.mxu0 %vm58_vm1, %v811_v19 }
 0xaf4   :  { %1462 = vmatprep.mubr.msk.f32.mxu0 %vm1591_vm0, %v1590_v0  ;;  %1459 = vmatpush3.msra.mxu0 %v1047_v48 }
 0xaf5   :  { %1460 = vmatprep.subr.mxu0 %v1590_v0 }
 0xaf6   :  { %1461 = vmatpush3.msra.mxu0 %v1046_v49  ;;  %v1290_v49 = vld [vmem:[#allocation4 + $0xa9] ss:$0 sm:$0xff] }
 0xbb3   :  { %v892_v22 = vpop.f32.mrf.mxu0 }
 0xbb4   :  { %v893_v23 = vadd.f32 %v1278_v4, %v892_v22  ;;  %v1594_v4 = vmov 0   ;;  %v1286_v22 = vld [vmem:[#allocation4 + $0xa6] ss:$0 sm:$0xff] }
 0xbb5   :  { %v1446_v25 = vpop.f32.mrf.mxu0  ;;  %1479 = vset.pattern.permute.xlu0 %v1594_v4 }
 0xbb6   :  { %v896_v26 = vsel %vm58_vm1, %v893_v23, 0.0  ;;  %1166 = vperm.xlu0 %1479, %v1162_v3  }
 0xbb7   :  { %v897_v27 = vrot.slane %v896_v26, 4 }
 0xbb9   :  { %v898_v28 = vadd.f32 %v897_v27, %v896_v26 }
 0xbbb   :  { %v899_v29 = vrot.slane %v898_v28, 2 }
 0xbbd   :  { %v900_v30 = vadd.f32 %v899_v29, %v898_v28 }
 0xbbf   :  { %v901_v11 = vrot.slane %v900_v30, 1 }
 0xbc1   :  { %v902_v31 = vadd.f32 %v901_v11, %v900_v30 }
 0xbc3   :  { %v904_v32 = vmul.f32 0.125, %v902_v31 }
 0xbc5   :  { %v905_v33 = vsub.f32 %v893_v23, %v904_v32 }
 0xbc7   :  { %v906_v34 = vmul.f32 %v905_v33, %v905_v33 }
 0xbc9   :  { %v907_v12 = vsel %vm58_vm1, %v906_v34, 0.0 }
 0xbca   :  { %v908_v35 = vrot.slane %v907_v12, 4 }
 0xbcc   :  { %v909_v13 = vadd.f32 %v908_v35, %v907_v12 }
 0xbce   :  { %v910_v17 = vrot.slane %v909_v13, 2 }
 0xbd0   :  { %v911_v36 = vadd.f32 %v910_v17, %v909_v13 }
 0xbd2   :  { %v912_v37 = vrot.slane %v911_v36, 1 }
 0xbd4   :  { %v913_v38 = vadd.f32 %v912_v37, %v911_v36 }
 0xbd6   :  { %v914_v39 = vmul.f32 0.125, %v913_v38 }
 0xbd8   :  { %v915_v40 = vadd.f32 1e-05, %v914_v39 }
 0xbda   :  { %1536 = vrsqrt.f32 %v915_v40 }
 0xbe7   :  { %v1537_v41 = vpop.eup %1536 }
 0xbe8   :  { %v917_v43 = vmul.f32 %v1537_v41, %v905_v33 }
 0xbea   :  { %v922_v45 = vmul.f32 %v1280_v42, %v917_v43  ;;  %v1288_v43 = vld [vmem:[#allocation4 + $0xa7] ss:$0 sm:$0xff] }
 0xbec   :  { %v927_v46 = vadd.f32 %v1281_v44, %v922_v45  ;;  %v1289_v45 = vld [vmem:[#allocation4 + $0xa8] ss:$0 sm:$0xff] }
 0xbee   :  { %v928_v47 = vmax.f32 %v927_v46, 0.0 }
 0xbf0   :  { %1456 = vmatmul.mubr.msk.f32.vlgmr.msra.gmra.mxu1 %vm58_vm1, %v928_v47 }
 0xbf1   :  { %1467 = vmatprep.mubr.msk.f32.mxu1 %vm1591_vm0, %v1590_v0  ;;  %1466 = vmatpush3.msra.mxu1 %v1161_v21 }
 0xcb0   :  { %v1009_v51 = vpop.f32.mrf.mxu1 }
 0xcb1   :  { %v1010_v52 = vadd.f32 %v1282_v50, %v1009_v51  ;;  %v1167_v50 = vpop.permute.xlu0 %1166 }
 0xcb2   :  { %v1457_v53 = vpop.f32.mrf.mxu1  ;;  %v1173_v51 = vmul.f32 %v1290_v49, %v1167_v50 }
 0xcb3   :  { %v1014_v54 = vsel %vm1013_vm2, %v1010_v52, 0.0  ;;  %v1292_v53 = vld [vmem:[#allocation4 + $0xaa] ss:$0 sm:$0xff] }
 0xcb4   :  { %v1015_v55 = vrot.slane %v1014_v54, 4 }
 0xcb6   :  { %v1016_v6 = vadd.f32 %v1015_v55, %v1014_v54 }
 0xcb8   :  { %v1017_v56 = vrot.slane %v1016_v6, 2 }
 0xcba   :  { %v1018_v57 = vadd.f32 %v1017_v56, %v1016_v6 }
 0xcbc   :  { %v1019_v58 = vrot.slane %v1018_v57, 1 }
 0xcbe   :  { %v1020_v59 = vadd.f32 %v1019_v58, %v1018_v57 }
 0xcc0   :  { %v1021_v60 = vmul.f32 0.125, %v1020_v59 }
 0xcc2   :  { %v1022_v61 = vsub.f32 %v1010_v52, %v1021_v60 }
 0xcc4   :  { %v1023_v62 = vmul.f32 %v1022_v61, %v1022_v61 }
 0xcc6   :  { %v1024_v0 = vsel %vm1013_vm2, %v1023_v62, 0.0 }
 0xcc7   :  { %v1025_v63 = vrot.slane %v1024_v0, 4 }
 0xcc9   :  { %v1026_v5 = vadd.f32 %v1025_v63, %v1024_v0 }
 0xccb   :  { %v1027_v7 = vrot.slane %v1026_v5, 2 }
 0xccd   :  { %v1028_v8 = vadd.f32 %v1027_v7, %v1026_v5 }
 0xccf   :  { %v1029_v9 = vrot.slane %v1028_v8, 1 }
 0xcd1   :  { %v1030_v10 = vadd.f32 %v1029_v9, %v1028_v8 }
 0xcd3   :  { %v1031_v14 = vmul.f32 0.125, %v1030_v10 }
 0xcd5   :  { %v1032_v15 = vadd.f32 1e-05, %v1031_v14 }
 0xcd7   :  { %1538 = vrsqrt.f32 %v1032_v15 }
 0xce4   :  { %v1539_v1 = vpop.eup %1538 }
 0xce5   :  { %v1034_v18 = vmul.f32 %v1539_v1, %v1022_v61 }
 0xce7   :  { %v1039_v19 = vmul.f32 %v1284_v16, %v1034_v18 }
 0xce9   :  { %v1044_v20 = vadd.f32 %v1285_v24, %v1039_v19 }
 0xceb   :  { %v1045_v2 = vmax.f32 %v1044_v20, 0.0 }
 0xced   :  { %1463 = vmatmul.mubr.msk.f32.vlgmr.msra.gmra.mxu0 %vm1013_vm2, %v1045_v2 }
 0xdad   :  { %v1124_v23 = vpop.f32.mrf.mxu0 }
 0xdae   :  { %v1125_v25 = vadd.f32 %v1286_v22, %v1124_v23 }
 0xdaf   :  { %v1464_v26 = vpop.f32.mrf.mxu0 }
 0xdb0   :  { %v1129_v27 = vsel %vm1128_vm3, %v1125_v25, 0.0 }
 0xdb1   :  { %v1130_v28 = vrot.slane %v1129_v27, 4 }
 0xdb3   :  { %v1131_v29 = vadd.f32 %v1130_v28, %v1129_v27 }
 0xdb5   :  { %v1132_v30 = vrot.slane %v1131_v29, 2 }
 0xdb7   :  { %v1133_v11 = vadd.f32 %v1132_v30, %v1131_v29 }
 0xdb9   :  { %v1134_v31 = vrot.slane %v1133_v11, 1 }
 0xdbb   :  { %v1135_v32 = vadd.f32 %v1134_v31, %v1133_v11 }
 0xdbd   :  { %v1136_v33 = vmul.f32 0.125, %v1135_v32 }
 0xdbf   :  { %v1137_v34 = vsub.f32 %v1125_v25, %v1136_v33 }
 0xdc1   :  { %v1138_v12 = vmul.f32 %v1137_v34, %v1137_v34 }
 0xdc3   :  { %v1139_v35 = vsel %vm1128_vm3, %v1138_v12, 0.0 }
 0xdc4   :  { %v1140_v13 = vrot.slane %v1139_v35, 4 }
 0xdc6   :  { %v1141_v17 = vadd.f32 %v1140_v13, %v1139_v35 }
 0xdc8   :  { %v1142_v36 = vrot.slane %v1141_v17, 2 }
 0xdca   :  { %v1143_v37 = vadd.f32 %v1142_v36, %v1141_v17 }
 0xdcc   :  { %v1144_v38 = vrot.slane %v1143_v37, 1 }
 0xdce   :  { %v1145_v39 = vadd.f32 %v1144_v38, %v1143_v37 }
 0xdd0   :  { %v1146_v40 = vmul.f32 0.125, %v1145_v39 }
 0xdd2   :  { %v1147_v41 = vadd.f32 1e-05, %v1146_v40 }
 0xdd4   :  { %1540 = vrsqrt.f32 %v1147_v41 }
 0xde1   :  { %v1541_v42 = vpop.eup %1540 }
 0xde2   :  { %v1149_v44 = vmul.f32 %v1541_v42, %v1137_v34 }
 0xde4   :  { %v1154_v46 = vmul.f32 %v1288_v43, %v1149_v44 }
 0xde6   :  { %v1159_v47 = vadd.f32 %v1289_v45, %v1154_v46 }
 0xde8   :  { %v1160_v48 = vmax.f32 %v1159_v47, 0.0 }
 0xdea   :  { %1468 = vmatmul.mubr.msk.f32.vlgmr.msra.gmra.mxu1 %vm1128_vm3, %v1160_v48 }
 0xeaa   :  { %v1243_v52 = vpop.f32.mrf.mxu1 }
 0xeab   :  { %v1244_v54 = vadd.f32 %v1243_v52, %v1173_v51 }
 0xeac   :  { %v1469_v55 = vpop.f32.mrf.mxu1 }
 0xead   :  { %v1252_v6 = vadd.f32 %v1292_v53, %v1244_v54 }
 0xeaf   :  { %1253 = vst [vmem:[%s1831_s3] sm:$0xff] %v1252_v6 }
 0xeb0   :  { %1258 = vsyncpa [#allocation3], 1 }
 0xeb1   :  { %1259 = vsyncpa [#allocation5], 1 }

</bundles_post_ra>
